<compile_context>
chip_gen: v5e
topology: v5e:2x2
jax: 0.10.0
libtpu: 0.0.40
codegen_flags: <defaults>
</compile_context>

<pallas_src>
import functools

import jax
import jax.numpy as jnp
from jax.experimental import pallas as pl
from jax.experimental.pallas import tpu as pltpu


# ---------------------------------------------------------------------------
# Kernel 1: weighted classification CE + L1 box regression (fused, single launch)
# Lane-dense layout: classes on sublanes, queries / boxes on lanes.
# ---------------------------------------------------------------------------
def _cls_bbox_kernel(logits_ref, labels_ref, w_ref, src_ref, tgt_ref,
                     cls_ref, l1_ref):
    x = logits_ref[...].astype(jnp.float32)          # [B, C1, Q]
    lab = labels_ref[...]                            # [B, 1, Q] int32
    w = w_ref[...].astype(jnp.float32)               # [1, C1, 1]
    b_sz, c1, q_sz = x.shape

    # one-hot built in-kernel from integer labels (no HBM one-hot).
    ci = jax.lax.broadcasted_iota(jnp.int32, (b_sz, c1, q_sz), 1)
    y = (lab == ci).astype(jnp.float32)              # [B, C1, Q]

    m = jnp.max(x, axis=1, keepdims=True)
    lse = m + jnp.log(jnp.sum(jnp.exp(x - m), axis=1, keepdims=True))
    tgt_logit = jnp.sum(x * y, axis=1, keepdims=True)
    nll = lse - tgt_logit                            # [B, 1, Q]
    wn = jnp.sum(y * w, axis=1, keepdims=True)       # weight of each query's target class
    cls_ref[...] = (jnp.sum(wn * nll) / jnp.sum(wn)).reshape(1, 1)

    # L1 sum; padded columns are zero in both src and tgt -> contribute 0.
    d = jnp.abs(src_ref[...] - tgt_ref[...])         # [6, Nmax]
    l1_ref[...] = jnp.sum(d).reshape(1, 1)


def cls_bbox_losses(pred_logits, target_classes, cls_weights, src_boxes, tgt_boxes):
    B, Q, C1 = pred_logits.shape
    logits_t = jnp.transpose(pred_logits, (0, 2, 1))          # [B, C1, Q] queries on lanes
    labels3 = target_classes.reshape(B, 1, Q).astype(jnp.int32)
    w3 = cls_weights.reshape(1, C1, 1).astype(jnp.float32)
    src_t = src_boxes.astype(jnp.float32).T                   # [6, Nmax]
    tgt_t = tgt_boxes.astype(jnp.float32).T

    cls_out, l1_out = pl.pallas_call(
        _cls_bbox_kernel,
        out_shape=(jax.ShapeDtypeStruct((1, 1), jnp.float32),
                   jax.ShapeDtypeStruct((1, 1), jnp.float32)),
        in_specs=[pl.BlockSpec(memory_space=pltpu.MemorySpace.VMEM)] * 5,
        out_specs=(pl.BlockSpec(memory_space=pltpu.MemorySpace.VMEM),
                   pl.BlockSpec(memory_space=pltpu.MemorySpace.VMEM)),
    )(logits_t, labels3, w3, src_t, tgt_t)
    return cls_out[0, 0], l1_out[0, 0]


# ---------------------------------------------------------------------------
# Kernel 2: segmentation loss statistics, grid = (B, V/TV)
#   outputs per batch element b: tp[c], sum_p[c], sum_y[c], ce_sum
#   (finalized into CE mean + SoftDice(batch_dice=True, do_bg=False, smooth=1e-5)
#    by a handful of scalar ops in the wrapper)
# ---------------------------------------------------------------------------
def _seg_stats_kernel(x_ref, lab_ref, tp_ref, sp_ref, sy_ref, ce_ref,
                      ce_acc, tp_acc, sp_acc, sy_acc,
                      *, c, tile_v, v_total, fg_bg, fgbg2, needs_mask):
    v = pl.program_id(1)
    last = pl.num_programs(1) - 1

    @pl.when(v == 0)
    def _init():
        ce_acc[...] = jnp.zeros_like(ce_acc)
        tp_acc[...] = jnp.zeros_like(tp_acc)
        sp_acc[...] = jnp.zeros_like(sp_acc)
        sy_acc[...] = jnp.zeros_like(sy_acc)

    def _update(masked):
        x = x_ref[...].astype(jnp.float32)            # [1, C, TV]
        lab = lab_ref[...].astype(jnp.int32)          # [1, 1, TV]  (native int dtype in HBM)

        if masked:
            pos = jax.lax.broadcasted_iota(jnp.int32, (1, 1, tile_v), 2)
            valid = (pos + v * tile_v) < v_total      # [1, 1, TV] bool

        # softmax statistics over the channel axis (axis=1)
        m = jnp.max(x, axis=1, keepdims=True)         # [1, 1, TV]
        e = jnp.exp(x - m)
        s = jnp.sum(e, axis=1, keepdims=True)
        lse = m + jnp.log(s)                          # [1, 1, TV]

        if fgbg2:
            # Specialized 2-channel (fg/bg) path: no one-hot, channel-1 stats only.
            y1b = lab > 0
            if masked:
                y1b = jnp.logical_and(y1b, valid)
            y1 = y1b.astype(jnp.float32)              # [1, 1, TV]
            x1 = x[:, 1:2, :]                         # fg logit
            x0 = jnp.sum(x, axis=1, keepdims=True) - x1
            tgt = jnp.where(y1b, x1, x0)              # x[label]
            ce_t = lse - tgt
            p1 = jnp.exp(x1 - lse)                    # exact softmax prob of the fg channel
            if masked:
                # selects (not multiplies): OOB-tail NaN/Inf garbage cannot propagate.
                ce_t = jnp.where(valid, ce_t, 0.0)
                p1 = jnp.where(valid, p1, 0.0)
            ce_acc[...] += ce_t[:, 0, :]
            tp_acc[...] += (p1 * y1)[:, 0, :]
            sp_acc[...] += p1[:, 0, :]
            sy_acc[...] += y1[:, 0, :]
        else:
            if fg_bg:
                lab = jnp.where(lab > 0, 1, 0)        # fg/bg threshold fused in-kernel
            ci = jax.lax.broadcasted_iota(jnp.int32, (1, c, tile_v), 1)
            yb = lab == ci
            if masked:
                yb = jnp.logical_and(yb, valid)
            y = yb.astype(jnp.float32)                # [1, C, TV]
            p = e * pl.reciprocal(s)                  # exact reciprocal (dice precision)
            tgt = jnp.sum(x * y, axis=1, keepdims=True)
            ce_t = lse - tgt
            if masked:
                ce_t = jnp.where(valid, ce_t, 0.0)
                p = jnp.where(valid, p, 0.0)
            ce_acc[...] += ce_t[:, 0, :]
            tp_acc[...] += (p * y)[0]
            sp_acc[...] += p[0]
            sy_acc[...] += y[0]

    if needs_mask:
        # Only the ragged tail tile pays the masking cost.
        @pl.when(v < last)
        def _full_tiles():
            _update(False)

        @pl.when(v == last)
        def _tail_tile():
            _update(True)
    else:
        _update(False)

    @pl.when(v == last)
    def _finalize():
        if fgbg2:
            tp_ref[...] = jnp.sum(tp_acc[...]).reshape(1, 1, 1)
            sp_ref[...] = jnp.sum(sp_acc[...]).reshape(1, 1, 1)
            sy_ref[...] = jnp.sum(sy_acc[...]).reshape(1, 1, 1)
        else:
            tp_ref[...] = jnp.sum(tp_acc[...], axis=1).reshape(1, 1, c)
            sp_ref[...] = jnp.sum(sp_acc[...], axis=1).reshape(1, 1, c)
            sy_ref[...] = jnp.sum(sy_acc[...], axis=1).reshape(1, 1, c)
        ce_ref[...] = jnp.sum(ce_acc[...]).reshape(1, 1, 1)


def _vmem_budget():
    """Generation-aware (VMEM capacity) working-set budget and scoped-vmem limit."""
    cap = 64 * 1024 * 1024
    try:
        info = pltpu.get_tpu_info()
        cap = int(getattr(info, "vmem_capacity_bytes", cap) or cap)
    except Exception:
        pass
    if cap >= 100 * 1024 * 1024:                      # v5e / v6e (128 MiB physical VMEM)
        return 16 * 1024 * 1024, 64 * 1024 * 1024
    return 10 * 1024 * 1024, 48 * 1024 * 1024         # v7x-class (64 MiB physical VMEM)


def _choose_tile_v(V, C, logit_itemsize, label_itemsize, fgbg2, budget_bytes,
                   max_tile_v=32768):
    """Pick TV (multiple of 128): double-buffered blocks + accumulators + f32 temps fit budget."""
    acc_lanes = 4 if fgbg2 else (1 + 3 * C)
    per_lane = (2 * (C * logit_itemsize + label_itemsize)   # double-buffered input blocks
                + acc_lanes * 4                             # VMEM accumulators
                + 6 * C * 4)                                # f32 temporaries (x, e, p, y, ...)
    tv = budget_bytes // per_lane
    tv = int(min(max_tile_v, max(128, tv)))
    tv = (tv // 128) * 128
    v_ceil = -(-V // 128) * 128
    return min(tv, v_ceil)


def seg_losses(seg_logits, seg_labels, *, fg_bg, max_tile_v=32768):
    """seg_logits [B, C, V] (native dtype); seg_labels [B, 1, V] (native integer dtype).

    Returns (segce, segdice) matching F.cross_entropy(mean) and
    SoftDiceLoss(nonlin=Softmax(dim=1), batch_dice=True, do_bg=False, smooth=1e-5).
    """
    B, C, V = seg_logits.shape
    assert C >= 2, "SoftDiceLoss(do_bg=False) needs at least 2 channels"
    assert seg_labels.shape == (B, 1, V)
    assert jnp.issubdtype(seg_labels.dtype, jnp.integer)

    fgbg2 = (C == 2)   # with 2 channels, label>0 <=> class 1 (fg/bg or already-binary labels)
    budget, vmem_limit = _vmem_budget()
    tv = _choose_tile_v(V, C,
                        jnp.dtype(seg_logits.dtype).itemsize,
                        jnp.dtype(seg_labels.dtype).itemsize,
                        fgbg2, budget, max_tile_v)
    nv = -(-V // tv)
    needs_mask = (nv * tv != V)   # no HBM pad copy: ragged tail is masked in-kernel
    cs = 1 if fgbg2 else C

    kernel = functools.partial(_seg_stats_kernel, c=C, tile_v=tv, v_total=V,
                               fg_bg=fg_bg, fgbg2=fgbg2, needs_mask=needs_mask)

    acc_shapes = [pltpu.VMEM((1, tv), jnp.float32)]                 # ce
    if fgbg2:
        acc_shapes += [pltpu.VMEM((1, tv), jnp.float32)] * 3        # tp / sp / sy (fg only)
    else:
        acc_shapes += [pltpu.VMEM((C, tv), jnp.float32)] * 3        # tp / sp / sy per class

    tp_o, sp_o, sy_o, ce_o = pl.pallas_call(
        kernel,
        out_shape=(jax.ShapeDtypeStruct((B, 1, cs), jnp.float32),
                   jax.ShapeDtypeStruct((B, 1, cs), jnp.float32),
                   jax.ShapeDtypeStruct((B, 1, cs), jnp.float32),
                   jax.ShapeDtypeStruct((B, 1, 1), jnp.float32)),
        grid_spec=pltpu.PrefetchScalarGridSpec(
            num_scalar_prefetch=0,
            grid=(B, nv),
            in_specs=[
                pl.BlockSpec((1, C, tv), lambda b, v: (b, 0, v)),
                pl.BlockSpec((1, 1, tv), lambda b, v: (b, 0, v)),
            ],
            out_specs=(
                pl.BlockSpec((1, 1, cs), lambda b, v: (b, 0, 0)),
                pl.BlockSpec((1, 1, cs), lambda b, v: (b, 0, 0)),
                pl.BlockSpec((1, 1, cs), lambda b, v: (b, 0, 0)),
                pl.BlockSpec((1, 1, 1), lambda b, v: (b, 0, 0)),
            ),
            scratch_shapes=acc_shapes),
        compiler_params=pltpu.CompilerParams(
            dimension_semantics=("parallel", "arbitrary"),   # B axis can use both TCs on v7x
            vmem_limit_bytes=vmem_limit),
    )(seg_logits, seg_labels)

    # Tiny combine / finalize (plain JAX): batch_dice=True sums stats over the batch.
    tp = jnp.sum(tp_o[:, 0, :], axis=0)
    sp = jnp.sum(sp_o[:, 0, :], axis=0)
    sy = jnp.sum(sy_o[:, 0, :], axis=0)
    segce = jnp.sum(ce_o) / jnp.float32(B * V)
    fp = sp - tp
    fn = sy - tp
    smooth = jnp.float32(1e-5)
    dc = (2.0 * tp + smooth) / (2.0 * tp + fp + fn + smooth)
    if not fgbg2:
        dc = dc[1:]                    # do_bg=False
    segdice = 1.0 - jnp.mean(dc)
    return segce, segdice


# ---------------------------------------------------------------------------
# TransoarCriterion forward (seg_proxy=True, seg_msa=False, focal_loss=False path)
# ---------------------------------------------------------------------------
def make_cls_weights(num_classes):
    # __init__: cat([1], full((num_classes,), 10)).float()
    return jnp.concatenate(
        [jnp.array([1.0], dtype=jnp.float32),
         jnp.full((num_classes,), 10.0, dtype=jnp.float32)])


def transoar_criterion_forward(outputs, targets, seg_targets, indices,
                               num_classes, seg_fg_bg=True,
                               only_class_labels=False, seg_max_tile_v=32768):
    """Mirrors TransoarCriterion.forward for the default flags (no dn_meta, no
    aux/enc outputs, no ocl flags), with the Hungarian matcher replaced by
    precomputed `indices`."""
    # TODO(synk): Hungarian matcher module is external and not provided; the
    #             matching `indices` are passed in precomputed instead.
    pred_logits = outputs['pred_logits']           # [B, Q, C+1]
    pred_boxes = outputs['pred_boxes']             # [B, Q, 6]
    pred_seg = outputs['pred_seg']                 # [B, Cseg, H, W, D]

    B, Q, C1 = pred_logits.shape
    cls_weights = make_cls_weights(num_classes)
    num_boxes = sum(int(t['labels'].shape[0]) for t in targets)

    losses = {}

    # ----- target classes (0 = no-object) as integer labels -----
    target_classes = jnp.zeros((B, Q), dtype=jnp.int32)
    for b, (src_idx, tgt_idx) in enumerate(indices):
        labels_b = targets[b]['labels'][tgt_idx].astype(jnp.int32)
        target_classes = target_classes.at[b, src_idx].set(labels_b)

    # ----- matched boxes padded to a static max (no per-matcher-result recompiles) -----
    max_boxes = B * Q
    src_pad = jnp.zeros((max_boxes, 6), jnp.float32)
    tgt_pad = jnp.zeros((max_boxes, 6), jnp.float32)
    have_boxes = bool(indices) and not only_class_labels
    if have_boxes:
        src_cat = jnp.concatenate(
            [pred_boxes[b][src_idx] for b, (src_idx, _) in enumerate(indices)], 0)
        tgt_cat = jnp.concatenate(
            [targets[b]['boxes'][tgt_idx] for b, (_, tgt_idx) in enumerate(indices)], 0)
        n_m = src_cat.shape[0]
        src_pad = src_pad.at[:n_m].set(src_cat.astype(jnp.float32))
        tgt_pad = tgt_pad.at[:n_m].set(tgt_cat.astype(jnp.float32))

    cls_loss, l1 = cls_bbox_losses(pred_logits, target_classes, cls_weights,
                                   src_pad, tgt_pad)
    losses['cls'] = cls_loss
    if have_boxes:
        # max(., 1) guards num_boxes == 0 (empty targets) against inf/NaN.
        losses['bbox'] = l1 / jnp.float32(max(num_boxes, 1))
        # TODO(synk): generalized_bbox_iou_3d / box_cxcyczwhd_to_xyzxyz are not
        #             provided in the reference; GIoU term reported as 0.
        losses['giou'] = jnp.float32(0.0)
    else:
        losses['bbox'] = jnp.float32(0.0)
        losses['giou'] = jnp.float32(0.0)

    # ----- segmentation losses (loss_segmentation, seg_proxy branch) -----
    Bc, Cseg, H, W, D = pred_seg.shape
    V = H * W * D
    seg_logits_flat = pred_seg.reshape(Bc, Cseg, V)       # native dtype (e.g. bf16), no copy-pad
    seg_lab = seg_targets.reshape(Bc, 1, V)               # native integer dtype (int8 ok);
    #                                                       fg/bg threshold is fused in-kernel
    segce, segdice = seg_losses(seg_logits_flat, seg_lab,
                                fg_bg=seg_fg_bg, max_tile_v=seg_max_tile_v)
    losses['segce'] = segce
    losses['segdice'] = segdice

    # TODO(synk): HausdorffDistanceMetric (hd95) is an external MONAI metric with
    #             no clean Pallas equivalent; reported as 0.
    losses['hd95'] = jnp.float32(0.0)

    return losses, indices


# ---------------------------------------------------------------------------
# Example run + pure-JAX cross-check
# ---------------------------------------------------------------------------
def _close(a, b, tol):
    a, b = float(a), float(b)
    return abs(a - b) <= tol * (1.0 + abs(b))


if __name__ == "__main__":
    key = jax.random.PRNGKey(0)
    k1, k2, k3, k4, k5 = jax.random.split(key, 5)

    B, Q = 2, 8
    num_classes = 4                     # logits have num_classes + 1 = 5 channels
    Cseg, H, W, D = 2, 16, 16, 14       # V = 3584: multi-tile grid + ragged tail mask

    pred_logits = jax.random.normal(k1, (B, Q, num_classes + 1), dtype=jnp.float32)
    pred_boxes = jax.nn.sigmoid(jax.random.normal(k2, (B, Q, 6), dtype=jnp.float32))
    pred_seg = jax.random.normal(k3, (B, Cseg, H, W, D)).astype(jnp.bfloat16)
    # int8 label volume: labels DMA 1 byte/voxel, thresholding fused in-kernel.
    seg_targets = jax.random.randint(k4, (B, 1, H, W, D), 0, 3,
                                     dtype=jnp.int32).astype(jnp.int8)

    outputs = {'pred_logits': pred_logits, 'pred_boxes': pred_boxes, 'pred_seg': pred_seg}

    targets = [
        {'labels': jnp.array([1, 3], dtype=jnp.int32),
         'boxes': jax.nn.sigmoid(jax.random.normal(k5, (2, 6), dtype=jnp.float32))},
        {'labels': jnp.array([2, 4, 1], dtype=jnp.int32),
         'boxes': jax.nn.sigmoid(
             jax.random.normal(jax.random.fold_in(k5, 1), (3, 6), dtype=jnp.float32))},
    ]

    # Precomputed matcher output: (pred_query_idx, target_idx) per batch element.
    indices = [
        (jnp.array([1, 3], dtype=jnp.int32), jnp.array([0, 1], dtype=jnp.int32)),
        (jnp.array([0, 2, 5], dtype=jnp.int32), jnp.array([0, 1, 2], dtype=jnp.int32)),
    ]

    losses, pos_indices = transoar_criterion_forward(
        outputs, targets, seg_targets, indices,
        num_classes=num_classes, seg_fg_bg=True, only_class_labels=False,
        seg_max_tile_v=1024)   # small tile at test shapes -> exercises the pipelined V grid

    losses = jax.tree_util.tree_map(jax.block_until_ready, losses)
    for k, v in losses.items():
        assert jnp.isfinite(jnp.asarray(v)).all(), f"non-finite loss for {k}"

    # ---- pure-JAX reference cross-check (fg/bg, Cseg==2 specialized path) ----
    tc = jnp.zeros((B, Q), jnp.int32)
    for b, (s_i, t_i) in enumerate(indices):
        tc = tc.at[b, s_i].set(targets[b]['labels'][t_i].astype(jnp.int32))
    w_full = make_cls_weights(num_classes)
    logp_c = jax.nn.log_softmax(pred_logits.astype(jnp.float32), axis=-1)
    nll = -jnp.take_along_axis(logp_c, tc[..., None], axis=-1)[..., 0]
    wv = w_full[tc]
    ref_cls = jnp.sum(wv * nll) / jnp.sum(wv)

    src_cat = jnp.concatenate([pred_boxes[b][s] for b, (s, _) in enumerate(indices)], 0)
    tgt_cat = jnp.concatenate([targets[b]['boxes'][t] for b, (_, t) in enumerate(indices)], 0)
    num_boxes = sum(int(t['labels'].shape[0]) for t in targets)
    ref_bbox = jnp.sum(jnp.abs(src_cat - tgt_cat)) / num_boxes

    seg_lab_ref = (seg_targets > 0).astype(jnp.int32).reshape(B, -1)
    seg_x = pred_seg.astype(jnp.float32).reshape(B, Cseg, -1)
    logp_s = jax.nn.log_softmax(seg_x, axis=1)
    p_s = jax.nn.softmax(seg_x, axis=1)
    y_s = jax.nn.one_hot(seg_lab_ref, Cseg, axis=1, dtype=jnp.float32)       # [B, C, V]
    ref_segce = -jnp.mean(jnp.sum(logp_s * y_s, axis=1))
    tp = jnp.sum(p_s * y_s, axis=(0, 2))
    fp = jnp.sum(p_s * (1.0 - y_s), axis=(0, 2))
    fn = jnp.sum((1.0 - p_s) * y_s, axis=(0, 2))
    dc = (2.0 * tp + 1e-5) / (2.0 * tp + fp + fn + 1e-5)
    ref_segdice = 1.0 - jnp.mean(dc[1:])

    assert _close(losses['cls'], ref_cls, 1e-4), (float(losses['cls']), float(ref_cls))
    assert _close(losses['bbox'], ref_bbox, 1e-4), (float(losses['bbox']), float(ref_bbox))
    assert _close(losses['segce'], ref_segce, 1e-3), (float(losses['segce']), float(ref_segce))
    assert _close(losses['segdice'], ref_segdice, 1e-2), (float(losses['segdice']), float(ref_segdice))

    # ---- also exercise the generic (C > 2) seg path, with a masked ragged tail ----
    C3, V3 = 3, 640
    x3 = jax.random.normal(jax.random.fold_in(key, 7), (B, C3, V3)).astype(jnp.bfloat16)
    lab3 = jax.random.randint(jax.random.fold_in(key, 8), (B, 1, V3), 0, C3,
                              dtype=jnp.int32).astype(jnp.int8)
    ce3, dice3 = seg_losses(x3, lab3, fg_bg=False, max_tile_v=256)
    ce3 = jax.block_until_ready(ce3)
    dice3 = jax.block_until_ready(dice3)

    x3f = x3.astype(jnp.float32)
    logp3 = jax.nn.log_softmax(x3f, axis=1)
    p3 = jax.nn.softmax(x3f, axis=1)
    y3 = jax.nn.one_hot(lab3[:, 0, :].astype(jnp.int32), C3, axis=1, dtype=jnp.float32)
    ref_ce3 = -jnp.mean(jnp.sum(logp3 * y3, axis=1))
    tp3 = jnp.sum(p3 * y3, axis=(0, 2))
    fp3 = jnp.sum(p3 * (1.0 - y3), axis=(0, 2))
    fn3 = jnp.sum((1.0 - p3) * y3, axis=(0, 2))
    dc3 = (2.0 * tp3 + 1e-5) / (2.0 * tp3 + fp3 + fn3 + 1e-5)
    ref_dice3 = 1.0 - jnp.mean(dc3[1:])
    assert _close(ce3, ref_ce3, 1e-3), (float(ce3), float(ref_ce3))
    assert _close(dice3, ref_dice3, 1e-2), (float(dice3), float(ref_dice3))

    print("KERNEL_OK")
</pallas_src>

<mosaic_0001>
module attributes {stable_mosaic.version = 11 : i64} {
  func.func @_cls_bbox_kernel(%arg0: memref<2x5x8xf32, #tpu.memory_space<vmem>>, %arg1: memref<2x1x8xi32, #tpu.memory_space<vmem>>, %arg2: memref<1x5x1xf32, #tpu.memory_space<vmem>>, %arg3: memref<6x16xf32, #tpu.memory_space<vmem>>, %arg4: memref<6x16xf32, #tpu.memory_space<vmem>>, %arg5: memref<1x1xf32, #tpu.memory_space<vmem>>, %arg6: memref<1x1xf32, #tpu.memory_space<vmem>>) attributes {dimension_semantics = [], scalar_prefetch = 0 : i64, scratch_operands = 0 : i64, tpu.core_type = #tpu.core_type<tc>} {
    %c0 = arith.constant 0 : index
    %c0_0 = arith.constant 0 : index
    %c0_1 = arith.constant 0 : index
    %0 = vector.load %arg0[%c0, %c0_0, %c0_1] : memref<2x5x8xf32, #tpu.memory_space<vmem>>, vector<2x5x8xf32>
    %c0_2 = arith.constant 0 : index
    %c0_3 = arith.constant 0 : index
    %c0_4 = arith.constant 0 : index
    %1 = vector.load %arg1[%c0_2, %c0_3, %c0_4] : memref<2x1x8xi32, #tpu.memory_space<vmem>>, vector<2x1x8xi32>
    %c0_5 = arith.constant 0 : index
    %c0_6 = arith.constant 0 : index
    %c0_7 = arith.constant 0 : index
    %2 = vector.load %arg2[%c0_5, %c0_6, %c0_7] : memref<1x5x1xf32, #tpu.memory_space<vmem>>, vector<1x5x1xf32>
    %3 = tpu.iota {dimensions = array<i32: 1>} : vector<2x5x8xi32>
    %4 = vector.broadcast %1 : vector<2x1x8xi32> to vector<2x5x8xi32>
    %5 = arith.cmpi eq, %4, %3 : vector<2x5x8xi32>
    %6 = arith.extui %5 : vector<2x5x8xi1> to vector<2x5x8xi32>
    %7 = arith.sitofp %6 : vector<2x5x8xi32> to vector<2x5x8xf32>
    %cst = arith.constant dense<0xFF800000> : vector<2x8xf32>
    %8 = vector.multi_reduction <maximumf>, %0, %cst [1] : vector<2x5x8xf32> to vector<2x8xf32>
    %9 = vector.shape_cast %8 : vector<2x8xf32> to vector<2x1x8xf32>
    %10 = vector.broadcast %9 : vector<2x1x8xf32> to vector<2x5x8xf32>
    %11 = arith.subf %0, %10 : vector<2x5x8xf32>
    %12 = math.exp %11 : vector<2x5x8xf32>
    %cst_8 = arith.constant dense<0.000000e+00> : vector<2x8xf32>
    %13 = vector.multi_reduction <add>, %12, %cst_8 [1] : vector<2x5x8xf32> to vector<2x8xf32>
    %14 = vector.shape_cast %13 : vector<2x8xf32> to vector<2x1x8xf32>
    %15 = math.log %14 : vector<2x1x8xf32>
    %16 = arith.addf %9, %15 : vector<2x1x8xf32>
    %17 = arith.mulf %0, %7 : vector<2x5x8xf32>
    %cst_9 = arith.constant dense<0.000000e+00> : vector<2x8xf32>
    %18 = vector.multi_reduction <add>, %17, %cst_9 [1] : vector<2x5x8xf32> to vector<2x8xf32>
    %19 = vector.shape_cast %18 : vector<2x8xf32> to vector<2x1x8xf32>
    %20 = arith.subf %16, %19 : vector<2x1x8xf32>
    %21 = vector.broadcast %2 : vector<1x5x1xf32> to vector<2x5x8xf32>
    %22 = arith.mulf %7, %21 : vector<2x5x8xf32>
    %cst_10 = arith.constant dense<0.000000e+00> : vector<2x8xf32>
    %23 = vector.multi_reduction <add>, %22, %cst_10 [1] : vector<2x5x8xf32> to vector<2x8xf32>
    %24 = vector.shape_cast %23 : vector<2x8xf32> to vector<2x1x8xf32>
    %25 = arith.mulf %24, %20 : vector<2x1x8xf32>
    %26 = vector.shape_cast %25 : vector<2x1x8xf32> to vector<1x2x1x8xf32>
    %cst_11 = arith.constant dense<0.000000e+00> : vector<1xf32>
    %27 = vector.multi_reduction <add>, %26, %cst_11 [1, 2, 3] : vector<1x2x1x8xf32> to vector<1xf32>
    %28 = vector.shape_cast %27 : vector<1xf32> to vector<1x1x1x1xf32>
    %29 = vector.extract %28[0, 0, 0, 0] : f32 from vector<1x1x1x1xf32>
    %30 = vector.shape_cast %24 : vector<2x1x8xf32> to vector<1x2x1x8xf32>
    %cst_12 = arith.constant dense<0.000000e+00> : vector<1xf32>
    %31 = vector.multi_reduction <add>, %30, %cst_12 [1, 2, 3] : vector<1x2x1x8xf32> to vector<1xf32>
    %32 = vector.shape_cast %31 : vector<1xf32> to vector<1x1x1x1xf32>
    %33 = vector.extract %32[0, 0, 0, 0] : f32 from vector<1x1x1x1xf32>
    %34 = arith.divf %29, %33 : f32
    %35 = vector.broadcast %34 : f32 to vector<1x1xf32>
    %c0_13 = arith.constant 0 : index
    %c0_14 = arith.constant 0 : index
    %36 = vector.load %arg5[%c0_13, %c0_14] : memref<1x1xf32, #tpu.memory_space<vmem>>, vector<1x1xf32>
    tpu.vector_store %arg5[%c0_13, %c0_14], %35 {strides = array<i32>} : memref<1x1xf32, #tpu.memory_space<vmem>>, vector<1x1xf32>,
    %c0_15 = arith.constant 0 : index
    %c0_16 = arith.constant 0 : index
    %37 = vector.load %arg3[%c0_15, %c0_16] : memref<6x16xf32, #tpu.memory_space<vmem>>, vector<6x16xf32>
    %c0_17 = arith.constant 0 : index
    %c0_18 = arith.constant 0 : index
    %38 = vector.load %arg4[%c0_17, %c0_18] : memref<6x16xf32, #tpu.memory_space<vmem>>, vector<6x16xf32>
    %39 = arith.subf %37, %38 : vector<6x16xf32>
    %40 = math.absf %39 : vector<6x16xf32>
    %41 = vector.shape_cast %40 : vector<6x16xf32> to vector<1x6x16xf32>
    %cst_19 = arith.constant dense<0.000000e+00> : vector<1xf32>
    %42 = vector.multi_reduction <add>, %41, %cst_19 [1, 2] : vector<1x6x16xf32> to vector<1xf32>
    %43 = vector.shape_cast %42 : vector<1xf32> to vector<1x1x1xf32>
    %44 = vector.extract %43[0, 0, 0] : f32 from vector<1x1x1xf32>
    %45 = vector.broadcast %44 : f32 to vector<1x1xf32>
    %c0_20 = arith.constant 0 : index
    %c0_21 = arith.constant 0 : index
    %46 = vector.load %arg6[%c0_20, %c0_21] : memref<1x1xf32, #tpu.memory_space<vmem>>, vector<1x1xf32>
    tpu.vector_store %arg6[%c0_20, %c0_21], %45 {strides = array<i32>} : memref<1x1xf32, #tpu.memory_space<vmem>>, vector<1x1xf32>,
    return
  }
}

</mosaic_0001>

<bundles_post_ra>
// kernel: tpu_custom_call.1
= control target key start
LH: loop header
LB: loop body
LE: loop exit
PB: predicated region body
PF: predicated region fallthrough
CT: control target
= control target key end

     0   :  { %12 = vsyncpa [#allocation3], 0  ;;  %v294_v1 = vmov 0   ;;  %s375_s0 = inlined_call_operand.vmem [shape: f32[2,5,8], index: 0, kind: input, shape index: {}]   ;;  %s376_s1 = inlined_call_operand.vmem [shape: s32[2,1,8], index: 1, kind: input, shape index: {}]   ;;  %s377_s2 = inlined_call_operand.vmem [shape: f32[1,5,1], index: 2, kind: input, shape index: {}]   ;;  %s378_s3 = inlined_call_operand.vmem [shape: f32[6,16], index: 3, kind: input, shape index: {}]   ;;  %s379_s4 = inlined_call_operand.vmem [shape: f32[6,16], index: 4, kind: input, shape index: {}]   ;;  %s380_s5 = inlined_call_operand.hbm [shape: f32[1,1], index: 5, kind: output, shape index: {0}]   ;;  %s381_s6 = inlined_call_operand.hbm [shape: f32[1,1], index: 6, kind: output, shape index: {1}]  }
   0x1   :  { %v28_v0 = vld [vmem:[%s377_s2] sm:$0x1f]  ;;  %229 = vset.pattern.permute.xlu0 %v294_v1 }
   0x2   :  { %13 = vsyncpa [#allocation5], 0  ;;  %100 = vperm.xlu0 %229, %v28_v0   ;;  %vm39_vm0 = vcmask 61440   ;;  %v24_v2 = vld [vmem:[%s375_s0] sm:$0x1f]  ;;  %v29_v24 = vlaneseq  ;;  %v295_v34 = vmov 0.0  }
   0x3   :  { %v25_v3 = vld [vmem:[%s375_s0 + $0x8] sm:$0x1f]  ;;  %v40_v4 = vsel %vm39_vm0, %v24_v2, -inf  ;;  %v230_v28 = vld [vmem:[%s376_s1] ss:$0 sm:$0xff]  ;;  %vm121_vm3 = vcmask 57344  }
   0x4   :  { %v47_v5 = vsel %vm39_vm0, %v25_v3, -inf  ;;  %v41_v6 = vrot.slane %v40_v4, 4  ;;  %v30_v27 = vshrl.u32 %v29_v24, 7  ;;  %v231_v30 = vld [vmem:[%s376_s1 + $0x1] ss:$0 sm:$0xff]  ;;  %vm170_vm4 = vcmask 128000  }
   0x5   :  { %v48_v7 = vrot.slane %v47_v5, 4  ;;  %s296_s8 = smov [#allocation4]   ;;  %s201_s12 = sshll.u32 %s381_s6, 4  ;;  %vm164_vm9 = vcmask 0   ;;  %s202_s12 = int_to_ptr.hbm [resolvable:$true] %s201_s12 }
   0x6   :  { %v42_v8 = vmax.f32 %v40_v4, %v41_v6  ;;  %vm33_vm1 = vcmp.eq.s32.totalorder %v230_v28, %v30_v27  ;;  %vm34_vm2 = vcmp.eq.s32.totalorder %v231_v30, %v30_v27  ;;  %s199_s9 = sshll.u32 %s296_s8, 4  ;;  %s297_s13 = smov [#allocation2]   ;;  %s200_s9 = int_to_ptr.vmem [resolvable:$true] %s199_s9 }
   0x7   :  { %v49_v9 = vmax.f32 %v47_v5, %v48_v7  ;;  %v215_v35 = vsel %vm33_vm1, 1.0, %v295_v34  ;;  %v216_v36 = vsel %vm34_vm2, 1.0, %v295_v34  ;;  %s188_s14 = sshll.u32 %s297_s13, 4  ;;  %s190_s17 = sshll.u32 %s380_s5, 4  ;;  %s189_s14 = int_to_ptr.vmem [resolvable:$true] %s188_s14  ;;  %s191_s17 = int_to_ptr.hbm [resolvable:$true] %s190_s17 }
   0x8   :  { %v43_v10 = vrot.slane %v42_v8, 2  ;;  %v80_v39 = vmul.f32 %v215_v35, %v24_v2  ;;  %v81_v40 = vmul.f32 %v216_v36, %v25_v3 }
   0x9   :  { %v50_v11 = vrot.slane %v49_v9, 2 }
   0xa   :  { %v44_v12 = vmax.f32 %v42_v8, %v43_v10  ;;  %v82_v43 = vsel %vm39_vm0, %v80_v39, 0.0  ;;  %v89_v44 = vsel %vm39_vm0, %v81_v40, 0.0 }
   0xb   :  { %v51_v13 = vmax.f32 %v49_v9, %v50_v11  ;;  %v83_v46 = vrot.slane %v82_v43, 4  ;;  %v90_v48 = vrot.slane %v89_v44, 4 }
   0xc   :  { %v45_v14 = vrot.slane %v44_v12, 1 }
   0xd   :  { %v52_v15 = vrot.slane %v51_v13, 1  ;;  %v84_v50 = vadd.f32 %v83_v46, %v82_v43  ;;  %v91_v52 = vadd.f32 %v90_v48, %v89_v44 }
   0xe   :  { %v46_v16 = vmax.f32 %v44_v12, %v45_v14 }
   0xf   :  { %v344_v17 = vmax.f32 %v51_v13, %v52_v15  ;;  %v85_v53 = vrot.slane %v84_v50, 2  ;;  %v92_v54 = vrot.slane %v91_v52, 2 }
  0x10   :  { %v54_v18 = vsub.f32 %v24_v2, %v46_v16 }
  0x11   :  { %v55_v19 = vsub.f32 %v25_v3, %v344_v17  ;;  %v86_v55 = vadd.f32 %v85_v53, %v84_v50  ;;  %v93_v58 = vadd.f32 %v92_v54, %v91_v52 }
  0x12   :  { %v56_v20 = vmul.f32 1.442695, %v54_v18 }
  0x13   :  { %v58_v21 = vmul.f32 1.442695, %v55_v19  ;;  %v87_v1 = vrot.slane %v86_v55, 1  ;;  %v94_v5 = vrot.slane %v93_v58, 1 }
  0x14   :  { %232 = vpow2.f32 %v56_v20 }
  0x15   :  { %234 = vpow2.f32 %v58_v21  ;;  %v88_v9 = vadd.f32 %v87_v1, %v86_v55  ;;  %v95_v13 = vadd.f32 %v94_v5, %v93_v58 }
  0x1a   :  { %v233_v22 = vpop.eup %232 }
  0x1b   :  { %v235_v23 = vpop.eup %234  ;;  %v60_v25 = vsel %vm39_vm0, %v233_v22, 0.0  ;;  %v166_v22 = vld [vmem:[%s378_s3] sm:$0x3f] }
  0x1c   :  { %v67_v26 = vsel %vm39_vm0, %v235_v23, 0.0  ;;  %v61_v29 = vrot.slane %v60_v25, 4 }
  0x1d   :  { %v68_v31 = vrot.slane %v67_v26, 4 }
  0x1e   :  { %v62_v32 = vadd.f32 %v61_v29, %v60_v25 }
  0x1f   :  { %v69_v33 = vadd.f32 %v68_v31, %v67_v26 }
  0x20   :  { %v63_v37 = vrot.slane %v62_v32, 2 }
  0x21   :  { %v70_v38 = vrot.slane %v69_v33, 2 }
  0x22   :  { %v64_v41 = vadd.f32 %v63_v37, %v62_v32 }
  0x23   :  { %v71_v42 = vadd.f32 %v70_v38, %v69_v33 }
  0x24   :  { %v65_v45 = vrot.slane %v64_v41, 1 }
  0x25   :  { %v72_v47 = vrot.slane %v71_v42, 1 }
  0x26   :  { %v66_v49 = vadd.f32 %v65_v45, %v64_v41 }
  0x27   :  { %v73_v51 = vadd.f32 %v72_v47, %v71_v42 }
  0x28   :  { %236 = vlog2.f32 %v66_v49 }
  0x29   :  { %238 = vlog2.f32 %v73_v51 }
  0x2e   :  { %v237_v56 = vpop.eup %236 }
  0x2f   :  { %v239_v59 = vpop.eup %238  ;;  %v75_v0 = vmul.f32 0.6931472, %v237_v56 }
  0x30   :  { %v77_v4 = vmul.f32 0.6931472, %v239_v59 }
  0x31   :  { %v78_v8 = vadd.f32 %v75_v0, %v46_v16  ;;  %v167_v16 = vld [vmem:[%s379_s4] sm:$0x3f] }
  0x32   :  { %v79_v12 = vadd.f32 %v77_v4, %v344_v17  ;;  %v168_v25 = vsub.f32 %v166_v22, %v167_v16 }
  0x33   :  { %v96_v20 = vsub.f32 %v78_v8, %v88_v9 }
  0x34   :  { %v97_v21 = vsub.f32 %v79_v12, %v95_v13  ;;  %v169_v33 = vand.u32 2147483647, %v168_v25 }
  0x36   :  { %v171_v34 = vsel %vm170_vm4, %v169_v33, 0.0 }
  0x74   :  { %v101_v57 = vpop.permute.xlu0 %100 }
  0x75   :  { %v103_v60 = vmul.f32 %v215_v35, %v101_v57  ;;  %v104_v61 = vmul.f32 %v216_v36, %v101_v57 }
  0x77   :  { %v105_v62 = vsel %vm39_vm0, %v103_v60, 0.0  ;;  %v112_v63 = vsel %vm39_vm0, %v104_v61, 0.0 }
  0x78   :  { %v106_v2 = vrot.slane %v105_v62, 4  ;;  %v113_v3 = vrot.slane %v112_v63, 4 }
  0x7a   :  { %v107_v6 = vadd.f32 %v106_v2, %v105_v62  ;;  %v114_v7 = vadd.f32 %v113_v3, %v112_v63 }
  0x7c   :  { %v108_v10 = vrot.slane %v107_v6, 2  ;;  %v115_v11 = vrot.slane %v114_v7, 2 }
  0x7e   :  { %v109_v14 = vadd.f32 %v108_v10, %v107_v6  ;;  %v116_v15 = vadd.f32 %v115_v11, %v114_v7 }
  0x80   :  { %v110_v18 = vrot.slane %v109_v14, 1  ;;  %v117_v19 = vrot.slane %v116_v15, 1 }
  0x82   :  { %v111_v23 = vadd.f32 %v110_v18, %v109_v14  ;;  %v118_v24 = vadd.f32 %v117_v19, %v116_v15 }
  0x84   :  { %v134_v17 = vsel %vm121_vm3, %v111_v23, 0.0  ;;  %v135_v26 = vsel %vm121_vm3, %v118_v24, 0.0  ;;  %v119_v27 = vmul.f32 %v111_v23, %v96_v20  ;;  %v120_v28 = vmul.f32 %v118_v24, %v97_v21 }
  0x85   :  { %v136_v29 = vadd.f32 %v135_v26, %v134_v17 }
  0x86   :  { %v122_v30 = vsel %vm121_vm3, %v119_v27, 0.0  ;;  %v123_v31 = vsel %vm121_vm3, %v120_v28, 0.0 }
  0x87   :  { %137 = vadd.xlane.f32.xlu1 %v136_v29  ;;  %v124_v32 = vadd.f32 %v123_v31, %v122_v30 }
  0x89   :  { %125 = vadd.xlane.f32.xlu0 %v124_v32 }
  0x8f   :  { %172 = vadd.xlane.f32.xlu1 %v171_v34 }
  0xfa   :  { %v138_v35 = vpop.xlane.xlu1 %137 }
  0xfb   :  { %v139_v36 = vrot.slane %v138_v35, 4 }
  0xfc   :  { %v126_v37 = vpop.xlane.xlu0 %125 }
  0xfd   :  { %v140_v38 = vadd.f32 %v139_v36, %v138_v35  ;;  %v127_v39 = vrot.slane %v126_v37, 4 }
  0xff   :  { %v141_v40 = vrot.slane %v140_v38, 2  ;;  %v128_v41 = vadd.f32 %v127_v39, %v126_v37 }
 0x101   :  { %v129_v42 = vrot.slane %v128_v41, 2  ;;  %v142_v43 = vadd.f32 %v141_v40, %v140_v38 }
 0x102   :  { %v173_v49 = vpop.xlane.xlu1 %172 }
 0x103   :  { %v130_v44 = vadd.f32 %v129_v42, %v128_v41  ;;  %v143_v45 = vrot.slane %v142_v43, 1  ;;  %v174_v50 = vrot.slane %v173_v49, 4 }
 0x105   :  { %v131_v46 = vrot.slane %v130_v44, 1  ;;  %v144_v48 = vadd.f32 %v143_v45, %v142_v43  ;;  %v175_v52 = vadd.f32 %v174_v50, %v173_v49 }
 0x107   :  { %v132_v47 = vadd.f32 %v131_v46, %v130_v44  ;;  %v176_v53 = vrot.slane %v175_v52, 2 }
 0x109   :  { %217 = vpush %v132_v47  ;;  %v177_v56 = vadd.f32 %v176_v53, %v175_v52 }
 0x10a   :  { %219 = vpush %v144_v48 }
 0x10b   :  { %v178_v61 = vrot.slane %v177_v56, 1 }
 0x10d   :  { %v179_v2 = vadd.f32 %v178_v61, %v177_v56 }
 0x13a   :  { %s366_s3 = spop %217 }
 0x13b   :  { %s220_s4 = spop %219 }
 0x13c   :  { %v146_v51 = vstv %s220_s4 }
 0x13d   :  { %240 = vrcp.f32 %v146_v51  ;;  %v158_v58 = vand.u32 2147483648, %v146_v51  ;;  %v156_v60 = vand.u32 2147483647, %v146_v51  ;;  %vm152_vm6 = vweird.f32 %v146_v51 }
 0x13f   :  { %v159_v63 = vor.u32 1.1754944e-38, %v158_v58  ;;  %vm157_vm8 = vcmp.eq.f32.partialorder %v156_v60, 8.507059e+37 }
 0x143   :  { %v241_v54 = vpop.eup %240 }
 0x144   :  { %v148_v55 = vmul.f32 %v241_v54, %v146_v51  ;;  %vm153_vm5 = vweird.f32 %v241_v54 }
 0x145   :  { %vm154_vm7 = vmor %vm152_vm6, %vm153_vm5 }
 0x146   :  { %v149_v57 = vsub.f32 1.0, %v148_v55 }
 0x148   :  { %v150_v59 = vmul.f32 %v241_v54, %v149_v57 }
 0x14a   :  { %v151_v62 = vadd.f32 %v241_v54, %v150_v59 }
 0x14c   :  { %v155_v0 = vsel %vm154_vm7, %v241_v54, %v151_v62 }
 0x14d   :  { %v160_v1 = vsel %vm157_vm8, %v159_v63, %v155_v0 }
 0x14e   :  { %221 = vpush %v160_v1 }
 0x14f   :  { %223 = vpush %v179_v2 }
 0x17f   :  { %s222_s18 = spop %221 }
 0x180   :  { %s162_s19 = smul.f32 %s222_s18, %s366_s3  ;;  %s224_s20 = spop %223 }
 0x181   :  { %v181_v3 = vstv %s224_s20 }
 0x182   :  { %v163_v4 = vstv %s162_s19  ;;  %182 = vst.msk [vmem:[#allocation4] sm:$0x1] %vm164_vm9, %v181_v3 }
 0x183   :  { %165 = vst.msk [vmem:[#allocation2] sm:$0x1] %vm164_vm9, %v163_v4  ;;  %204 = dma.vmem_to_hbm [thread:$0]  %s200_s9, 16, %s202_s12, [#allocation5]  }
 0x184   :  { %193 = dma.vmem_to_hbm [thread:$0]  %s189_s14, 16, %s191_s17, [#allocation3]  }
 0x185   :  { %290 = dma.done.wait [#allocation3], 16  }
 0x186   :  { %291 = vsyncadd [#allocation3], 4294967280 }
 0x187   :  { %292 = dma.done.wait [#allocation5], 16  }
 0x188   :  { %293 = vsyncadd [#allocation5], 4294967280 }
 0x189   :  { %213 = vsyncpa [#allocation3], 1 }
 0x18a   :  { %214 = vsyncpa [#allocation5], 1 }

</bundles_post_ra>
